<compile_context>
chip_gen: v5e
topology: v5e:2x2
jax: 0.10.0
libtpu: 0.0.40
codegen_flags: <defaults>
</compile_context>

<pallas_src>
import functools
import math

import jax
import jax.numpy as jnp
from jax.experimental import pallas as pl
from jax.experimental.pallas import tpu as pltpu

_SQRT1_2 = 1.0 / math.sqrt(2.0)
_SQRT_2_OVER_PI = math.sqrt(2.0 / math.pi)


def _gelu(x, use_tanh=False):
    if use_tanh:
        # tanh-approx GELU: transcendental runs on the otherwise-idle EUP slot.
        return 0.5 * x * (1.0 + jnp.tanh(_SQRT_2_OVER_PI * (x + 0.044715 * x * x * x)))
    # PyTorch nn.GELU() default: 0.5 * x * (1 + erf(x / sqrt(2)))
    return 0.5 * x * (1.0 + jax.lax.erf(x * _SQRT1_2))


def mlp_modif_kernel(xT_ref,
                     w1T_ref, b1_ref,
                     w2T_ref, b2_ref,   # BatchNorm1d (eval) folded in on the host
                     w3T_ref, b3_ref,
                     w4T_ref, b4_ref,
                     outT_ref,
                     *, use_tanh_gelu):
    # Feature-major layout: columns = batch samples (dense 128-wide lane axis),
    # rows = features. h^T = W^T @ x^T, biases are (features, 1) columns.
    x = xT_ref[...].astype(jnp.float32)                              # (F, TILE_B)

    # fc1 -> dropout1 (identity in eval) -> GELU
    h = _gelu(jnp.dot(w1T_ref[...], x, preferred_element_type=jnp.float32)
              + b1_ref[...], use_tanh_gelu)                          # (32, TILE_B)

    # fc2 (+ folded BatchNorm1d) -> GELU
    h = _gelu(jnp.dot(w2T_ref[...], h, preferred_element_type=jnp.float32)
              + b2_ref[...], use_tanh_gelu)                          # (10, TILE_B)

    # fc3 -> dropout2 (identity in eval) -> GELU
    h = _gelu(jnp.dot(w3T_ref[...], h, preferred_element_type=jnp.float32)
              + b3_ref[...], use_tanh_gelu)                          # (32, TILE_B)

    # fc4
    out = (jnp.dot(w4T_ref[...], h, preferred_element_type=jnp.float32)
           + b4_ref[...])                                            # (C, TILE_B)
    outT_ref[...] = out.astype(outT_ref.dtype)


def _cdiv(a, b):
    return (a + b - 1) // b


def _round_up(n, m):
    return _cdiv(n, m) * m


def mlp_modif_forward(x, params, *, max_tile_b=4096, min_grid_steps=2,
                      use_tanh_gelu=False):
    """x: [B, input_size] float32. params: dict of weights / biases / BN stats."""
    B, F = x.shape
    C = params["w4"].shape[1]

    # --- Fold eval-mode BatchNorm1d into fc2 (exact re-association) ---------
    eps = 1e-5
    scale = params["gamma"] * jax.lax.rsqrt(params["rvar"] + eps)        # (1, 10)
    w2 = params["w2"] * scale                                            # (32, 10)
    b2 = (params["b2"] - params["rmean"]) * scale + params["beta"]       # (1, 10)

    # --- Feature-major operands: weights transposed, biases as columns ------
    weights = (
        params["w1"].T, params["b1"].T,    # (32, F),  (32, 1)
        w2.T, b2.T,                        # (10, 32), (10, 1)
        params["w3"].T, params["b3"].T,    # (32, 10), (32, 1)
        params["w4"].T, params["b4"].T,    # (C, 32),  (C, 1)
    )

    # --- Batch tiling: batch on the lane axis, pad only to a 128 multiple ---
    b128 = _round_up(B, 128)
    n_lane_blocks = b128 // 128
    n_steps = max(_cdiv(b128, max_tile_b), min(min_grid_steps, n_lane_blocks))
    tile_b = 128 * _cdiv(n_lane_blocks, n_steps)       # multiple of 128 lanes
    b_pad = n_steps * tile_b                            # < one lane-block waste/step

    xT = x.T                                            # (F, B)
    if b_pad != B:
        xT = jnp.pad(xT, ((0, 0), (0, b_pad - B)))

    # Weights/biases are tiny full-shape blocks with a constant block index ->
    # DMA'd once and resident in VMEM across the whole grid.
    w_specs = [pl.BlockSpec(w.shape, lambda i: (0, 0)) for w in weights]

    h1, h2, h3 = 32, 10, 32
    flops = 2 * b_pad * (F * h1 + h1 * h2 + h2 * h3 + h3 * C)
    transcendentals = b_pad * (h1 + h2 + h3)            # one erf/tanh per GELU lane
    bytes_accessed = b_pad * (F + C) * 4 + sum(int(w.size) * 4 for w in weights)

    kernel = functools.partial(mlp_modif_kernel, use_tanh_gelu=use_tanh_gelu)

    outT = pl.pallas_call(
        kernel,
        out_shape=jax.ShapeDtypeStruct((C, b_pad), jnp.float32),
        grid=(n_steps,),
        in_specs=[pl.BlockSpec((F, tile_b), lambda i: (0, i))] + w_specs,
        out_specs=pl.BlockSpec((C, tile_b), lambda i: (0, i)),
        compiler_params=pltpu.CompilerParams(
            dimension_semantics=("parallel",),          # megacore sharding on v7x
            vmem_limit_bytes=32 * 1024 * 1024,          # safe on v5e/v6e/v7x
        ),
        cost_estimate=pl.CostEstimate(
            flops=flops,
            transcendentals=transcendentals,
            bytes_accessed=bytes_accessed,
        ),
    )(xT, *weights)
    return outT[:, :B].T                                # back to (B, C)


def init_params(key, input_size, num_classes):
    ks = jax.random.split(key, 12)

    def lin(kw, kb, fan_in, fan_out):
        bound = 1.0 / math.sqrt(fan_in)
        w = jax.random.uniform(kw, (fan_in, fan_out), jnp.float32, -bound, bound)
        b = jax.random.uniform(kb, (1, fan_out), jnp.float32, -bound, bound)
        return w, b

    w1, b1 = lin(ks[0], ks[1], input_size, 32)
    w2, b2 = lin(ks[2], ks[3], 32, 10)
    w3, b3 = lin(ks[4], ks[5], 10, 32)
    w4, b4 = lin(ks[6], ks[7], 32, num_classes)

    # BatchNorm1d(10): deterministic, non-trivial eval statistics / affine params.
    gamma = 1.0 + 0.1 * jax.random.normal(ks[8], (1, 10), jnp.float32)
    beta = 0.1 * jax.random.normal(ks[9], (1, 10), jnp.float32)
    rmean = 0.2 * jax.random.normal(ks[10], (1, 10), jnp.float32)
    rvar = 1.0 + 0.5 * jax.random.uniform(ks[11], (1, 10), jnp.float32)

    return dict(
        w1=w1, b1=b1, w2=w2, b2=b2,
        gamma=gamma, beta=beta, rmean=rmean, rvar=rvar,
        w3=w3, b3=b3, w4=w4, b4=b4,
    )


def reference_forward(x, p):
    # Pure-JAX reference with the *unfolded* BatchNorm (matches PyTorch eval math).
    def gelu(v):
        return 0.5 * v * (1.0 + jax.lax.erf(v / math.sqrt(2.0)))
    h = gelu(x @ p["w1"] + p["b1"])
    h = h @ p["w2"] + p["b2"]
    h = (h - p["rmean"]) * jax.lax.rsqrt(p["rvar"] + 1e-5) * p["gamma"] + p["beta"]
    h = gelu(h)
    h = gelu(h @ p["w3"] + p["b3"])
    return h @ p["w4"] + p["b4"]


if __name__ == "__main__":
    key = jax.random.PRNGKey(0)
    k_x, k_p = jax.random.split(key)

    batch, input_size, num_classes = 8, 16, 4
    x = jax.random.normal(k_x, (batch, input_size), jnp.float32)
    params = init_params(k_p, input_size, num_classes)

    out = jax.block_until_ready(mlp_modif_forward(x, params))
    ref = reference_forward(x, params)
    assert out.shape == (batch, num_classes)
    # Tiny tolerance slack only for the (exact-in-real-arithmetic) BN folding.
    assert jnp.allclose(out, ref, atol=1e-4, rtol=1e-4), (out, ref)

    # Non-128-multiple batch: lane padding + multi-step grid path.
    x_big = jax.random.normal(k_x, (1037, input_size), jnp.float32)
    out_big = jax.block_until_ready(mlp_modif_forward(x_big, params))
    ref_big = reference_forward(x_big, params)
    assert out_big.shape == (1037, num_classes)
    assert jnp.allclose(out_big, ref_big, atol=1e-4, rtol=1e-4)

    # Optional EUP (tanh-approx) GELU path: compiles/runs; intentionally approximate.
    out_tanh = jax.block_until_ready(
        mlp_modif_forward(x_big, params, use_tanh_gelu=True))
    assert out_tanh.shape == (1037, num_classes)
    assert bool(jnp.all(jnp.isfinite(out_tanh)))
    assert float(jnp.max(jnp.abs(out_tanh - ref_big))) < 0.1

    print("KERNEL_OK")
</pallas_src>

<mosaic_0001>
module attributes {stable_mosaic.version = 11 : i64} {
  func.func @mlp_modif_kernel(%arg0: i32, %arg1: memref<16x128xf32, #tpu.memory_space<vmem>>, %arg2: memref<32x16xf32, #tpu.memory_space<vmem>>, %arg3: memref<32x1xf32, #tpu.memory_space<vmem>>, %arg4: memref<10x32xf32, #tpu.memory_space<vmem>>, %arg5: memref<10x1xf32, #tpu.memory_space<vmem>>, %arg6: memref<32x10xf32, #tpu.memory_space<vmem>>, %arg7: memref<32x1xf32, #tpu.memory_space<vmem>>, %arg8: memref<4x32xf32, #tpu.memory_space<vmem>>, %arg9: memref<4x1xf32, #tpu.memory_space<vmem>>, %arg10: memref<4x128xf32, #tpu.memory_space<vmem>>) attributes {dimension_semantics = [#tpu.dimension_semantics<parallel>], iteration_bounds = array<i64: 1>, scalar_prefetch = 0 : i64, scratch_operands = 0 : i64, tpu.core_type = #tpu.core_type<tc>, window_params = [{transform_indices = @transform_0, window_bounds = array<i64: 16, 128>}, {pipeline_mode = #tpu.pipeline_mode<synchronous>, transform_indices = @transform_1, window_bounds = array<i64: 32, 16>}, {pipeline_mode = #tpu.pipeline_mode<synchronous>, transform_indices = @transform_2, window_bounds = array<i64: 32, 1>}, {pipeline_mode = #tpu.pipeline_mode<synchronous>, transform_indices = @transform_3, window_bounds = array<i64: 10, 32>}, {pipeline_mode = #tpu.pipeline_mode<synchronous>, transform_indices = @transform_4, window_bounds = array<i64: 10, 1>}, {pipeline_mode = #tpu.pipeline_mode<synchronous>, transform_indices = @transform_5, window_bounds = array<i64: 32, 10>}, {pipeline_mode = #tpu.pipeline_mode<synchronous>, transform_indices = @transform_6, window_bounds = array<i64: 32, 1>}, {pipeline_mode = #tpu.pipeline_mode<synchronous>, transform_indices = @transform_7, window_bounds = array<i64: 4, 32>}, {pipeline_mode = #tpu.pipeline_mode<synchronous>, transform_indices = @transform_8, window_bounds = array<i64: 4, 1>}, {transform_indices = @transform_9, window_bounds = array<i64: 4, 128>}]} {
    %c0 = arith.constant 0 : index
    %c0_0 = arith.constant 0 : index
    %0 = vector.load %arg1[%c0, %c0_0] : memref<16x128xf32, #tpu.memory_space<vmem>>, vector<16x128xf32>
    %c0_1 = arith.constant 0 : index
    %c0_2 = arith.constant 0 : index
    %1 = vector.load %arg2[%c0_1, %c0_2] : memref<32x16xf32, #tpu.memory_space<vmem>>, vector<32x16xf32>
    %cst = arith.constant dense<0.000000e+00> : vector<32x128xf32>
    %2 = tpu.matmul %1, %0, %cst {dimension_numbers = #tpu.dot_dimension_numbers<[1], [0], [0], [1], [0, 0, 1, 1], [], []>} : vector<32x16xf32>, vector<16x128xf32>, vector<32x128xf32> -> vector<32x128xf32>
    %c0_3 = arith.constant 0 : index
    %c0_4 = arith.constant 0 : index
    %3 = vector.load %arg3[%c0_3, %c0_4] : memref<32x1xf32, #tpu.memory_space<vmem>>, vector<32x1xf32>
    %4 = vector.broadcast %3 : vector<32x1xf32> to vector<32x128xf32>
    %5 = arith.addf %2, %4 : vector<32x128xf32>
    %cst_5 = arith.constant 5.000000e-01 : f32
    %6 = vector.broadcast %cst_5 : f32 to vector<32x128xf32>
    %7 = arith.mulf %6, %5 : vector<32x128xf32>
    %cst_6 = arith.constant 0.707106769 : f32
    %8 = vector.broadcast %cst_6 : f32 to vector<32x128xf32>
    %9 = arith.mulf %5, %8 : vector<32x128xf32>
    %10 = math.erf %9 : vector<32x128xf32>
    %cst_7 = arith.constant 1.000000e+00 : f32
    %11 = vector.broadcast %cst_7 : f32 to vector<32x128xf32>
    %12 = arith.addf %11, %10 : vector<32x128xf32>
    %13 = arith.mulf %7, %12 : vector<32x128xf32>
    %c0_8 = arith.constant 0 : index
    %c0_9 = arith.constant 0 : index
    %14 = vector.load %arg4[%c0_8, %c0_9] : memref<10x32xf32, #tpu.memory_space<vmem>>, vector<10x32xf32>
    %cst_10 = arith.constant dense<0.000000e+00> : vector<10x128xf32>
    %15 = tpu.matmul %14, %13, %cst_10 {dimension_numbers = #tpu.dot_dimension_numbers<[1], [0], [0], [1], [0, 0, 1, 1], [], []>} : vector<10x32xf32>, vector<32x128xf32>, vector<10x128xf32> -> vector<10x128xf32>
    %c0_11 = arith.constant 0 : index
    %c0_12 = arith.constant 0 : index
    %16 = vector.load %arg5[%c0_11, %c0_12] : memref<10x1xf32, #tpu.memory_space<vmem>>, vector<10x1xf32>
    %17 = vector.broadcast %16 : vector<10x1xf32> to vector<10x128xf32>
    %18 = arith.addf %15, %17 : vector<10x128xf32>
    %cst_13 = arith.constant 5.000000e-01 : f32
    %19 = vector.broadcast %cst_13 : f32 to vector<10x128xf32>
    %20 = arith.mulf %19, %18 : vector<10x128xf32>
    %cst_14 = arith.constant 0.707106769 : f32
    %21 = vector.broadcast %cst_14 : f32 to vector<10x128xf32>
    %22 = arith.mulf %18, %21 : vector<10x128xf32>
    %23 = math.erf %22 : vector<10x128xf32>
    %cst_15 = arith.constant 1.000000e+00 : f32
    %24 = vector.broadcast %cst_15 : f32 to vector<10x128xf32>
    %25 = arith.addf %24, %23 : vector<10x128xf32>
    %26 = arith.mulf %20, %25 : vector<10x128xf32>
    %c0_16 = arith.constant 0 : index
    %c0_17 = arith.constant 0 : index
    %27 = vector.load %arg6[%c0_16, %c0_17] : memref<32x10xf32, #tpu.memory_space<vmem>>, vector<32x10xf32>
    %cst_18 = arith.constant dense<0.000000e+00> : vector<32x128xf32>
    %28 = tpu.matmul %27, %26, %cst_18 {dimension_numbers = #tpu.dot_dimension_numbers<[1], [0], [0], [1], [0, 0, 1, 1], [], []>} : vector<32x10xf32>, vector<10x128xf32>, vector<32x128xf32> -> vector<32x128xf32>
    %c0_19 = arith.constant 0 : index
    %c0_20 = arith.constant 0 : index
    %29 = vector.load %arg7[%c0_19, %c0_20] : memref<32x1xf32, #tpu.memory_space<vmem>>, vector<32x1xf32>
    %30 = vector.broadcast %29 : vector<32x1xf32> to vector<32x128xf32>
    %31 = arith.addf %28, %30 : vector<32x128xf32>
    %cst_21 = arith.constant 5.000000e-01 : f32
    %32 = vector.broadcast %cst_21 : f32 to vector<32x128xf32>
    %33 = arith.mulf %32, %31 : vector<32x128xf32>
    %cst_22 = arith.constant 0.707106769 : f32
    %34 = vector.broadcast %cst_22 : f32 to vector<32x128xf32>
    %35 = arith.mulf %31, %34 : vector<32x128xf32>
    %36 = math.erf %35 : vector<32x128xf32>
    %cst_23 = arith.constant 1.000000e+00 : f32
    %37 = vector.broadcast %cst_23 : f32 to vector<32x128xf32>
    %38 = arith.addf %37, %36 : vector<32x128xf32>
    %39 = arith.mulf %33, %38 : vector<32x128xf32>
    %c0_24 = arith.constant 0 : index
    %c0_25 = arith.constant 0 : index
    %40 = vector.load %arg8[%c0_24, %c0_25] : memref<4x32xf32, #tpu.memory_space<vmem>>, vector<4x32xf32>
    %cst_26 = arith.constant dense<0.000000e+00> : vector<4x128xf32>
    %41 = tpu.matmul %40, %39, %cst_26 {dimension_numbers = #tpu.dot_dimension_numbers<[1], [0], [0], [1], [0, 0, 1, 1], [], []>} : vector<4x32xf32>, vector<32x128xf32>, vector<4x128xf32> -> vector<4x128xf32>
    %c0_27 = arith.constant 0 : index
    %c0_28 = arith.constant 0 : index
    %42 = vector.load %arg9[%c0_27, %c0_28] : memref<4x1xf32, #tpu.memory_space<vmem>>, vector<4x1xf32>
    %43 = vector.broadcast %42 : vector<4x1xf32> to vector<4x128xf32>
    %44 = arith.addf %41, %43 : vector<4x128xf32>
    %c0_29 = arith.constant 0 : index
    %c0_30 = arith.constant 0 : index
    %45 = vector.load %arg10[%c0_29, %c0_30] : memref<4x128xf32, #tpu.memory_space<vmem>>, vector<4x128xf32>
    tpu.vector_store %arg10[%c0_29, %c0_30], %44 {strides = array<i32>} : memref<4x128xf32, #tpu.memory_space<vmem>>, vector<4x128xf32>,
    return
  }
  func.func @transform_0(%arg0: i32) -> (i32, i32) {
    %c0_i32 = arith.constant 0 : i32
    %c0_i32_0 = arith.constant 0 : i32
    return %c0_i32, %arg0 : i32, i32
  }
  func.func @transform_1(%arg0: i32) -> (i32, i32) {
    %c0_i32 = arith.constant 0 : i32
    %c0_i32_0 = arith.constant 0 : i32
    %c0_i32_1 = arith.constant 0 : i32
    return %c0_i32, %c0_i32_0 : i32, i32
  }
  func.func @transform_2(%arg0: i32) -> (i32, i32) {
    %c0_i32 = arith.constant 0 : i32
    %c0_i32_0 = arith.constant 0 : i32
    %c0_i32_1 = arith.constant 0 : i32
    return %c0_i32, %c0_i32_0 : i32, i32
  }
  func.func @transform_3(%arg0: i32) -> (i32, i32) {
    %c0_i32 = arith.constant 0 : i32
    %c0_i32_0 = arith.constant 0 : i32
    %c0_i32_1 = arith.constant 0 : i32
    return %c0_i32, %c0_i32_0 : i32, i32
  }
  func.func @transform_4(%arg0: i32) -> (i32, i32) {
    %c0_i32 = arith.constant 0 : i32
    %c0_i32_0 = arith.constant 0 : i32
    %c0_i32_1 = arith.constant 0 : i32
    return %c0_i32, %c0_i32_0 : i32, i32
  }
  func.func @transform_5(%arg0: i32) -> (i32, i32) {
    %c0_i32 = arith.constant 0 : i32
    %c0_i32_0 = arith.constant 0 : i32
    %c0_i32_1 = arith.constant 0 : i32
    return %c0_i32, %c0_i32_0 : i32, i32
  }
  func.func @transform_6(%arg0: i32) -> (i32, i32) {
    %c0_i32 = arith.constant 0 : i32
    %c0_i32_0 = arith.constant 0 : i32
    %c0_i32_1 = arith.constant 0 : i32
    return %c0_i32, %c0_i32_0 : i32, i32
  }
  func.func @transform_7(%arg0: i32) -> (i32, i32) {
    %c0_i32 = arith.constant 0 : i32
    %c0_i32_0 = arith.constant 0 : i32
    %c0_i32_1 = arith.constant 0 : i32
    return %c0_i32, %c0_i32_0 : i32, i32
  }
  func.func @transform_8(%arg0: i32) -> (i32, i32) {
    %c0_i32 = arith.constant 0 : i32
    %c0_i32_0 = arith.constant 0 : i32
    %c0_i32_1 = arith.constant 0 : i32
    return %c0_i32, %c0_i32_0 : i32, i32
  }
  func.func @transform_9(%arg0: i32) -> (i32, i32) {
    %c0_i32 = arith.constant 0 : i32
    %c0_i32_0 = arith.constant 0 : i32
    return %c0_i32, %arg0 : i32, i32
  }
}

</mosaic_0001>

<bundles_post_ra>
// kernel: tpu_custom_call.1
= control target key start
LH: loop header
LB: loop body
LE: loop exit
PB: predicated region body
PF: predicated region fallthrough
CT: control target
= control target key end

     0   :  { %v787_v3 = vmov 0   ;;  %vm63_vm0 = vcmask 130048   ;;  %s1158_s0 = inlined_call_operand.vmem [shape: f32[16,128], index: 0, kind: input, shape index: {}]   ;;  %s1159_s1 = inlined_call_operand.vmem [shape: f32[32,16], index: 1, kind: input, shape index: {}]   ;;  %s1160_s2 = inlined_call_operand.vmem [shape: f32[32,1], index: 2, kind: input, shape index: {}]   ;;  %s1161_s3 = inlined_call_operand.vmem [shape: f32[10,32], index: 3, kind: input, shape index: {}]   ;;  %s1162_s4 = inlined_call_operand.vmem [shape: f32[10,1], index: 4, kind: input, shape index: {}]   ;;  %s1163_s5 = inlined_call_operand.vmem [shape: f32[32,10], index: 5, kind: input, shape index: {}]   ;;  %s1164_s6 = inlined_call_operand.vmem [shape: f32[32,1], index: 6, kind: input, shape index: {}]   ;;  %s1165_s7 = inlined_call_operand.vmem [shape: f32[4,32], index: 7, kind: input, shape index: {}]   ;;  %s1166_s8 = inlined_call_operand.vmem [shape: f32[4,1], index: 8, kind: input, shape index: {}]   ;;  %s1167_s9 = inlined_call_operand.hbm [shape: f32[4,128], index: 9, kind: output, shape index: {}]  }
   0x1   :  { %v34_v0 = vld [vmem:[%s1158_s0 + $0x8] sm:$0xff]  ;;  %v42_v1 = vld [vmem:[%s1160_s2 + $0x18] sm:$0xff]  ;;  %738 = vset.pattern.permute.xlu0 %v787_v3  ;;  %v33_v4 = vld [vmem:[%s1158_s0] sm:$0xff]  ;;  %739 = vset.pattern.permute.xlu1 %v787_v3 }
   0x2   :  { %v40_v2 = vld [vmem:[%s1160_s2 + $0x8] sm:$0xff]  ;;  %90 = vmatpush.msra.mxu0 %v34_v0  ;;  %732 = vmatpush.msra.mxu3 %v34_v0  ;;  %v35_v5 = vld [vmem:[%s1159_s1] sm:$0xff]  ;;  %v38_v6 = vld [vmem:[%s1159_s1 + $0x18] sm:$0xff] }
   0x3   :  { %60 = vperm.xlu0 %738, %v42_v1   ;;  %50 = vperm.xlu1 %739, %v40_v2  }
   0x4   :  { %91 = vmatpush.msra.mxu0 %v33_v4  ;;  %733 = vmatpush.msra.mxu3 %v33_v4 }
   0x5   :  { %14 = vsyncpa [#allocation3], 0  ;;  %710 = vmatmul.msk.f32.vlgmr.msra.gmra.mxu0 %vm63_vm0, %v35_v5  ;;  %713 = vmatmul.msk.f32.vlgmr.msra.gmra.mxu3 %vm63_vm0, %v38_v6  ;;  %v41_v7 = vld [vmem:[%s1160_s2 + $0x10] sm:$0xff]  ;;  %v39_v8 = vld [vmem:[%s1160_s2] sm:$0xff]  ;;  %s788_s27 = smov [#allocation2]   ;;  %s701_s10 = sshll.u32 %s1167_s9, 4  ;;  %s702_s10 = int_to_ptr.hbm [resolvable:$true] %s701_s10 }
   0x6   :  { %740 = vset.pattern.permute.xlu2 %v787_v3  ;;  %v36_v9 = vld [vmem:[%s1159_s1 + $0x8] sm:$0xff]  ;;  %v420_v10 = vld [vmem:[%s1164_s6 + $0x18] sm:$0xff]  ;;  %v419_v11 = vld [vmem:[%s1164_s6 + $0x10] sm:$0xff]  ;;  %s699_s28 = sshll.u32 %s788_s27, 4  ;;  %s700_s28 = int_to_ptr.vmem [resolvable:$true] %s699_s28 }
   0x7   :  { %v37_v12 = vld [vmem:[%s1159_s1 + $0x10] sm:$0xff]  ;;  %v417_v13 = vld [vmem:[%s1164_s6] sm:$0xff] }
   0x8   :  { %v664_v14 = vld [vmem:[%s1166_s8] sm:$0xf] }
   0xb   :  { %55 = vperm.xlu0 %738, %v41_v7   ;;  %45 = vperm.xlu1 %739, %v39_v8  }
   0xd   :  { %711 = vmatmul.msk.f32.gmra.mxu0 %vm63_vm0, %v36_v9 }
  0x13   :  { %438 = vperm.xlu0 %738, %v420_v10   ;;  %433 = vperm.xlu1 %739, %v419_v11  }
  0x15   :  { %712 = vmatmul.msk.f32.gmra.mxu0 %vm63_vm0, %v37_v12 }
  0x1b   :  { %423 = vperm.xlu0 %738, %v417_v13   ;;  %667 = vperm.xlu1 %739, %v664_v14  }
  0x75   :  { %v51_v15 = vpop.permute.xlu1 %50  ;;  %v61_v21 = vpop.permute.xlu0 %60 }
  0x7d   :  { %v46_v16 = vpop.permute.xlu1 %45  ;;  %v56_v38 = vpop.permute.xlu0 %55 }
  0x82   :  { %v93_v17 = vpop.f32.mrf.mxu0 }
  0x83   :  { %v885_v18 = vadd.f32 %v93_v17, %v46_v16 }
  0x85   :  { %v888_v19 = vmul.f32 0.70710677, %v885_v18 }
  0x87   :  { %v113_v20 = vmul.f32 %v888_v19, %v888_v19 }
  0x88   :  { %v102_v22 = vpop.f32.mrf.mxu3 }
  0x89   :  { %v892_v23 = vmin.f32 %v113_v20, 16.0  ;;  %v894_v24 = vadd.f32 %v102_v22, %v61_v21 }
  0x8a   :  { %v96_v25 = vpop.f32.mrf.mxu0 }
  0x8b   :  { %v897_v26 = vmul.f32 0.70710677, %v894_v24  ;;  %v899_v27 = vadd.f32 %v96_v25, %v51_v15  ;;  %v126_v28 = vmul.f32 3.8918573e-05, %v892_v23  ;;  %v115_v32 = vmul.f32 2.1237322e-06, %v892_v23 }
  0x8d   :  { %v233_v29 = vmul.f32 %v897_v26, %v897_v26  ;;  %v905_v30 = vmul.f32 0.70710677, %v899_v27  ;;  %v127_v31 = vadd.f32 0.001143296, %v126_v28  ;;  %v116_v42 = vadd.f32 0.00028619796, %v115_v32 }
  0x8f   :  { %v908_v33 = vmin.f32 %v233_v29, 16.0  ;;  %v153_v34 = vmul.f32 %v905_v30, %v905_v30  ;;  %v128_v35 = vmul.f32 %v127_v31, %v892_v23  ;;  %v117_v55 = vmul.f32 %v116_v42, %v892_v23 }
  0x91   :  { %v235_v36 = vmul.f32 2.1237322e-06, %v908_v33  ;;  %v914_v37 = vmin.f32 %v153_v34, 16.0  ;;  %v246_v40 = vmul.f32 3.8918573e-05, %v908_v33 }
  0x92   :  { %v99_v39 = vpop.f32.mrf.mxu0  ;;  %v129_v41 = vadd.f32 0.014752088, %v128_v35  ;;  %v118_v2 = vadd.f32 0.0036580483, %v117_v55 }
  0x93   :  { %v236_v43 = vadd.f32 0.00028619796, %v235_v36  ;;  %v155_v44 = vmul.f32 2.1237322e-06, %v914_v37  ;;  %v918_v45 = vadd.f32 %v99_v39, %v56_v38  ;;  %v247_v46 = vadd.f32 0.001143296, %v246_v40 }
  0x94   :  { %v166_v47 = vmul.f32 3.8918573e-05, %v914_v37  ;;  %v130_v48 = vmul.f32 %v129_v41, %v892_v23  ;;  %v119_v14 = vmul.f32 %v118_v2, %v892_v23 }
  0x95   :  { %v237_v49 = vmul.f32 %v236_v43, %v908_v33  ;;  %v156_v50 = vadd.f32 0.00028619796, %v155_v44  ;;  %v924_v51 = vmul.f32 0.70710677, %v918_v45  ;;  %v248_v52 = vmul.f32 %v247_v46, %v908_v33 }
  0x96   :  { %v167_v53 = vadd.f32 0.001143296, %v166_v47  ;;  %v131_v54 = vadd.f32 0.112945676, %v130_v48  ;;  %v120_v32 = vadd.f32 0.05243302, %v119_v14 }
  0x97   :  { %v238_v56 = vadd.f32 0.0036580483, %v237_v49  ;;  %v193_v57 = vmul.f32 %v924_v51, %v924_v51  ;;  %v249_v58 = vadd.f32 0.014752088, %v248_v52  ;;  %v157_v61 = vmul.f32 %v156_v50, %v914_v37 }
  0x98   :  { %v168_v59 = vmul.f32 %v167_v53, %v914_v37  ;;  %v132_v60 = vmul.f32 %v131_v54, %v892_v23  ;;  %v121_v46 = vmul.f32 %v120_v32, %v892_v23 }
  0x99   :  { %v933_v62 = vmin.f32 %v193_v57, 16.0  ;;  %v250_v63 = vmul.f32 %v249_v58, %v908_v33  ;;  %v239_v3 = vmul.f32 %v238_v56, %v908_v33  ;;  %v158_v8 = vadd.f32 0.0036580483, %v157_v61 }
  0x9a   :  { %v169_v0 = vadd.f32 0.014752088, %v168_v59  ;;  %v133_v1 = vadd.f32 0.4994258, %v132_v60  ;;  %v122_v55 = vadd.f32 0.18741608, %v121_v46 }
  0x9b   :  { %v195_v4 = vmul.f32 2.1237322e-06, %v933_v62  ;;  %v251_v5 = vadd.f32 0.112945676, %v250_v63  ;;  %v206_v6 = vmul.f32 3.8918573e-05, %v933_v62  ;;  %v159_v25 = vmul.f32 %v158_v8, %v914_v37 }
  0x9c   :  { %v170_v7 = vmul.f32 %v169_v0, %v914_v37  ;;  %v134_v9 = vmul.f32 %v133_v1, %v892_v23  ;;  %v240_v15 = vadd.f32 0.05243302, %v239_v3  ;;  %v123_v3 = vmul.f32 %v122_v55, %v892_v23  ;;  %v283_v55 = vld [vmem:[%s1162_s4] sm:$0xff] }
  0x9d   :  { %v196_v10 = vadd.f32 0.00028619796, %v195_v4  ;;  %v252_v11 = vmul.f32 %v251_v5, %v908_v33  ;;  %v207_v12 = vadd.f32 0.001143296, %v206_v6  ;;  %v160_v40 = vadd.f32 0.05243302, %v159_v25 }
  0x9e   :  { %v171_v13 = vadd.f32 0.112945676, %v170_v7  ;;  %v943_v16 = vadd.f32 1.0, %v134_v9  ;;  %v241_v34 = vmul.f32 %v240_v15, %v908_v33 }
  0x9f   :  { %v197_v17 = vmul.f32 %v196_v10, %v933_v62  ;;  %v253_v20 = vadd.f32 0.4994258, %v252_v11  ;;  %v208_v21 = vmul.f32 %v207_v12, %v933_v62  ;;  %v161_v48 = vmul.f32 %v160_v40, %v914_v37 }
  0xa0   :  { %v172_v22 = vmul.f32 %v171_v13, %v914_v37  ;;  %741 = vrcp.f32 %v943_v16  ;;  %v242_v42 = vadd.f32 0.18741608, %v241_v34  ;;  %v145_v10 = vand.u32 2147483647, %v943_v16  ;;  %v284_v34 = vld [vmem:[%s1162_s4 + $0x8] sm:$0x3] }
  0xa1   :  { %v254_v28 = vmul.f32 %v253_v20, %v908_v33  ;;  %v209_v29 = vadd.f32 0.014752088, %v208_v21  ;;  %v198_v35 = vadd.f32 0.0036580483, %v197_v17  ;;  %v162_v57 = vadd.f32 0.18741608, %v161_v48  ;;  %292 = vperm.xlu2 %740, %v284_v34  }
  0xa2   :  { %v173_v31 = vadd.f32 0.4994258, %v172_v22  ;;  %v243_v52 = vmul.f32 %v242_v42, %v908_v33  ;;  %v147_v11 = vand.u32 2147483648, %v943_v16  ;;  %vm141_vm9 = vweird.f32 %v943_v16 }
  0xa3   :  { %v255_v36 = vadd.f32 1.0, %v254_v28  ;;  %v210_v38 = vmul.f32 %v209_v29, %v933_v62  ;;  %v199_v47 = vmul.f32 %v198_v35, %v933_v62  ;;  %v163_v6 = vmul.f32 %v162_v57, %v914_v37 }
  0xa4   :  { %v174_v39 = vmul.f32 %v173_v31, %v914_v37  ;;  %v244_v63 = vadd.f32 1.1283791, %v243_v52  ;;  %v108_v29 = vmul.f32 0.5, %v894_v24  ;;  %v124_v24 = vadd.f32 1.1283791, %v123_v3 }
  0xa5   :  { %743 = vrcp.f32 %v255_v36  ;;  %v211_v43 = vadd.f32 0.112945676, %v210_v38  ;;  %v200_v56 = vadd.f32 0.05243302, %v199_v47  ;;  %v265_v1 = vand.u32 2147483647, %v255_v36 }
  0xa6   :  { %v954_v41 = vpop.eup %741  ;;  %v956_v44 = vadd.f32 1.0, %v174_v39  ;;  %v267_v33 = vand.u32 2147483648, %v255_v36  ;;  %v245_v23 = vmul.f32 %v244_v63, %v897_v26  ;;  %vm261_vm2 = vweird.f32 %v255_v36 }
  0xa7   :  { %v212_v49 = vmul.f32 %v211_v43, %v933_v62  ;;  %v137_v50 = vmul.f32 %v954_v41, %v943_v16  ;;  %v201_v4 = vmul.f32 %v200_v56, %v933_v62  ;;  %vm266_vm3 = vcmp.eq.f32.partialorder %v265_v1, 8.507059e+37 }
  0xa8   :  { %745 = vrcp.f32 %v956_v44  ;;  %v268_v14 = vor.u32 1.1754944e-38, %v267_v33  ;;  %vm181_vm6 = vweird.f32 %v956_v44  ;;  %v187_v17 = vand.u32 2147483648, %v956_v44 }
  0xa9   :  { %v213_v53 = vadd.f32 0.4994258, %v212_v49  ;;  %v138_v60 = vsub.f32 1.0, %v137_v50  ;;  %v202_v13 = vadd.f32 0.18741608, %v201_v4  ;;  %vm142_vm7 = vweird.f32 %v954_v41  ;;  %287 = vperm.xlu2 %740, %v283_v55  }
  0xaa   :  { %v185_v22 = vand.u32 2147483647, %v956_v44  ;;  %v164_v28 = vadd.f32 1.1283791, %v163_v6  ;;  %v188_v40 = vor.u32 1.1754944e-38, %v187_v17  ;;  %vm998_vm10 = vmor %vm141_vm9, %vm142_vm7  ;;  %vm146_vm11 = vcmp.eq.f32.partialorder %v145_v10, 8.507059e+37 }
  0xab   :  { %v744_v54 = vpop.eup %743  ;;  %v214_v59 = vmul.f32 %v213_v53, %v933_v62  ;;  %v139_v9 = vmul.f32 %v954_v41, %v138_v60  ;;  %v203_v35 = vmul.f32 %v202_v13, %v933_v62  ;;  %v281_v10 = vld [vmem:[%s1161_s3] sm:$0xff] }
  0xac   :  { %v257_v58 = vmul.f32 %v744_v54, %v255_v36  ;;  %vm262_vm1 = vweird.f32 %v744_v54  ;;  %vm186_vm12 = vcmp.eq.f32.partialorder %v185_v22, 8.507059e+37  ;;  %v165_v16 = vmul.f32 %v164_v28, %v905_v30 }
  0xad   :  { %v967_v2 = vadd.f32 1.0, %v214_v59  ;;  %vm263_vm4 = vmor %vm261_vm2, %vm262_vm1  ;;  %v140_v26 = vadd.f32 %v954_v41, %v139_v9  ;;  %v204_v49 = vadd.f32 1.1283791, %v203_v35  ;;  %vm295_vm1 = vcmask 261120  }
  0xae   :  { %v746_v61 = vpop.eup %745  ;;  %v258_v0 = vsub.f32 1.0, %v257_v58 }
  0xaf   :  { %v177_v5 = vmul.f32 %v746_v61, %v956_v44  ;;  %747 = vrcp.f32 %v967_v2  ;;  %vm182_vm5 = vweird.f32 %v746_v61  ;;  %v144_v62 = vsel %vm998_vm10, %v954_v41, %v140_v26 }
  0xb0   :  { %v259_v7 = vmul.f32 %v744_v54, %v258_v0  ;;  %vm984_vm8 = vmor %vm181_vm6, %vm182_vm5  ;;  %v148_v44 = vor.u32 1.1754944e-38, %v147_v11  ;;  %v227_v47 = vand.u32 2147483648, %v967_v2  ;;  %v225_v52 = vand.u32 2147483647, %v967_v2 }
  0xb1   :  { %v178_v8 = vsub.f32 1.0, %v177_v5  ;;  %v125_v41 = vmul.f32 %v124_v24, %v888_v19  ;;  %vm221_vm14 = vweird.f32 %v967_v2  ;;  %v205_v58 = vmul.f32 %v204_v49, %v924_v51  ;;  %v418_v19 = vld [vmem:[%s1164_s6 + $0x8] sm:$0xff] }
  0xb2   :  { %v260_v12 = vadd.f32 %v744_v54, %v259_v7  ;;  %v228_v57 = vor.u32 1.1754944e-38, %v227_v47  ;;  %vm226_vm0 = vcmp.eq.f32.partialorder %v225_v52, 8.507059e+37  ;;  %v106_v5 = vmul.f32 0.5, %v899_v27  ;;  %428 = vperm.xlu2 %740, %v418_v19   ;;  %v282_v27 = vld [vmem:[%s1161_s3 + $0x8] sm:$0x3] }
  0xb3   :  { %v179_v37 = vmul.f32 %v746_v61, %v178_v8  ;;  %v105_v7 = vmul.f32 0.5, %v885_v18  ;;  %vm454_vm10 = vcmask 1041408  }
  0xb4   :  { %v264_v15 = vsel %vm263_vm4, %v744_v54, %v260_v12  ;;  %v149_v54 = vsel %vm146_vm11, %v148_v44, %v144_v62  ;;  %vm441_vm11 = vcmask 80896  }
  0xb5   :  { %v269_v20 = vsel %vm266_vm3, %v268_v14, %v264_v15  ;;  %v180_v21 = vadd.f32 %v746_v61, %v179_v37  ;;  %v748_v25 = vpop.eup %747  ;;  %v150_v60 = vmul.f32 %v149_v54, %v125_v41 }
  0xb6   :  { %v270_v31 = vmul.f32 %v269_v20, %v245_v23  ;;  %v217_v36 = vmul.f32 %v748_v25, %v967_v2  ;;  %vm222_vm13 = vweird.f32 %v748_v25  ;;  %v107_v2 = vmul.f32 0.5, %v918_v45 }
  0xb7   :  { %v184_v38 = vsel %vm984_vm8, %v746_v61, %v180_v21  ;;  %vm223_vm15 = vmor %vm221_vm14, %vm222_vm13  ;;  %v714_v3 = vclamps-f32 %v150_v60, 1.0 }
  0xb8   :  { %v717_v39 = vclamps-f32 %v270_v31, 1.0  ;;  %v218_v43 = vsub.f32 1.0, %v217_v36  ;;  %v189_v48 = vsel %vm186_vm12, %v188_v40, %v184_v38 }
  0xb9   :  { %v190_v30 = vmul.f32 %v189_v48, %v165_v16  ;;  %v273_v6 = vadd.f32 1.0, %v714_v3 }
  0xba   :  { %v276_v46 = vadd.f32 1.0, %v717_v39  ;;  %v219_v50 = vmul.f32 %v748_v25, %v218_v43 }
  0xbb   :  { %v715_v0 = vclamps-f32 %v190_v30, 1.0  ;;  %v277_v9 = vmul.f32 %v273_v6, %v105_v7 }
  0xbc   :  { %v280_v53 = vmul.f32 %v276_v46, %v108_v29  ;;  %v220_v56 = vadd.f32 %v748_v25, %v219_v50 }
  0xbd   :  { %v274_v33 = vadd.f32 1.0, %v715_v0 }
  0xbe   :  { %314 = vmatpush.msra.mxu1 %v280_v53  ;;  %v224_v59 = vsel %vm223_vm15, %v748_v25, %v220_v56 }
  0xbf   :  { %v229_v61 = vsel %vm226_vm0, %v228_v57, %v224_v59  ;;  %v278_v8 = vmul.f32 %v274_v33, %v106_v5 }
  0xc0   :  { %v230_v63 = vmul.f32 %v229_v61, %v205_v58 }
  0xc2   :  { %v716_v1 = vclamps-f32 %v230_v63, 1.0 }
  0xc4   :  { %v275_v4 = vadd.f32 1.0, %v716_v1 }
  0xc6   :  { %v279_v51 = vmul.f32 %v275_v4, %v107_v2 }
  0xc8   :  { %315 = vmatpush.msra.mxu1 %v279_v51 }
  0xca   :  { %316 = vmatpush.msra.mxu1 %v278_v8 }
  0xcc   :  { %317 = vmatpush.msra.mxu1 %v277_v9 }
  0xcd   :  { %718 = vmatmul.msk.f32.vlgmr.msra.gmra.mxu1 %vm295_vm1, %v281_v10 }
  0xd5   :  { %719 = vmatmul.msk.f32.gmra.mxu1 %vm295_vm1, %v282_v27 }
  0xfb   :  { %v293_v45 = vpop.permute.xlu2 %292 }
 0x103   :  { %v288_v18 = vpop.permute.xlu2 %287 }
 0x14a   :  { %v319_v11 = vpop.f32.mrf.mxu1 }
 0x14b   :  { %v1028_v23 = vadd.f32 %v319_v11, %v288_v18 }
 0x14d   :  { %v1031_v12 = vmul.f32 0.70710677, %v1028_v23 }
 0x14f   :  { %v329_v13 = vmul.f32 %v1031_v12, %v1031_v12 }
 0x151   :  { %v330_v14 = vmin.f32 %v329_v13, 16.0 }
 0x152   :  { %v322_v37 = vpop.f32.mrf.mxu1 }
 0x153   :  { %v331_v15 = vmul.f32 2.1237322e-06, %v330_v14  ;;  %v1035_v17 = vadd.f32 %v322_v37, %v293_v45  ;;  %v342_v20 = vmul.f32 3.8918573e-05, %v330_v14 }
 0x155   :  { %v332_v21 = vadd.f32 0.00028619796, %v331_v15  ;;  %v1038_v22 = vmul.f32 0.70710677, %v1035_v17  ;;  %v343_v26 = vadd.f32 0.001143296, %v342_v20 }
 0x157   :  { %v369_v25 = vmul.f32 %v1038_v22, %v1038_v22  ;;  %v344_v28 = vmul.f32 %v343_v26, %v330_v14  ;;  %v333_v29 = vmul.f32 %v332_v21, %v330_v14 }
 0x159   :  { %v370_v31 = vmin.f32 %v369_v25, 16.0  ;;  %v345_v32 = vadd.f32 0.014752088, %v344_v28  ;;  %v334_v38 = vadd.f32 0.0036580483, %v333_v29 }
 0x15b   :  { %v371_v34 = vmul.f32 2.1237322e-06, %v370_v31  ;;  %v382_v35 = vmul.f32 3.8918573e-05, %v370_v31  ;;  %v346_v36 = vmul.f32 %v345_v32, %v330_v14  ;;  %v335_v44 = vmul.f32 %v334_v38, %v330_v14 }
 0x15d   :  { %v372_v24 = vadd.f32 0.00028619796, %v371_v34  ;;  %v383_v39 = vadd.f32 0.001143296, %v382_v35  ;;  %v347_v40 = vadd.f32 0.112945676, %v346_v36 }
 0x15e   :  { %v336_v50 = vadd.f32 0.05243302, %v335_v44  ;;  %v325_v35 = vmul.f32 0.5, %v1028_v23  ;;  %v414_v23 = vld [vmem:[%s1163_s5 + $0x8] sm:$0xff] }
 0x15f   :  { %v373_v42 = vmul.f32 %v372_v24, %v370_v31  ;;  %v384_v43 = vmul.f32 %v383_v39, %v370_v31  ;;  %v348_v62 = vmul.f32 %v347_v40, %v330_v14  ;;  %v416_v24 = vld [vmem:[%s1163_s5 + $0x18] sm:$0xff]  ;;  %v439_v39 = vpop.permute.xlu0 %438 }
 0x160   :  { %v337_v41 = vmul.f32 %v336_v50, %v330_v14 }
 0x161   :  { %v385_v16 = vadd.f32 0.014752088, %v384_v43  ;;  %v374_v46 = vadd.f32 0.0036580483, %v373_v42  ;;  %v349_v47 = vadd.f32 0.4994258, %v348_v62 }
 0x162   :  { %v338_v58 = vadd.f32 0.18741608, %v337_v41 }
 0x163   :  { %v386_v48 = vmul.f32 %v385_v16, %v370_v31  ;;  %v350_v49 = vmul.f32 %v349_v47, %v330_v14  ;;  %v375_v53 = vmul.f32 %v374_v46, %v370_v31 }
 0x164   :  { %v339_v0 = vmul.f32 %v338_v58, %v330_v14 }
 0x165   :  { %v387_v52 = vadd.f32 0.112945676, %v386_v48  ;;  %v351_v54 = vadd.f32 1.0, %v350_v49  ;;  %v376_v30 = vadd.f32 0.05243302, %v375_v53 }
 0x166   :  { %v340_v5 = vadd.f32 1.1283791, %v339_v0 }
 0x167   :  { %v388_v55 = vmul.f32 %v387_v52, %v370_v31  ;;  %749 = vrcp.f32 %v351_v54  ;;  %v377_v61 = vmul.f32 %v376_v30, %v370_v31  ;;  %v363_v19 = vand.u32 2147483648, %v351_v54  ;;  %v424_v40 = vpop.permute.xlu0 %423  ;;  %v429_v52 = vpop.permute.xlu2 %428 }
 0x168   :  { %v361_v4 = vand.u32 2147483647, %v351_v54  ;;  %vm357_vm3 = vweird.f32 %v351_v54  ;;  %v341_v27 = vmul.f32 %v340_v5, %v1031_v12  ;;  %v326_v12 = vmul.f32 0.5, %v1035_v17  ;;  %v415_v17 = vld [vmem:[%s1163_s5 + $0x10] sm:$0xff] }
 0x169   :  { %v389_v56 = vadd.f32 0.4994258, %v388_v55  ;;  %v378_v1 = vadd.f32 0.18741608, %v377_v61  ;;  %v364_v8 = vor.u32 1.1754944e-38, %v363_v19 }
 0x16a   :  { %vm362_vm5 = vcmp.eq.f32.partialorder %v361_v4, 8.507059e+37 }
 0x16b   :  { %v390_v57 = vmul.f32 %v389_v56, %v370_v31  ;;  %v379_v51 = vmul.f32 %v378_v1, %v370_v31 }
 0x16d   :  { %v391_v59 = vadd.f32 1.0, %v390_v57  ;;  %v750_v60 = vpop.eup %749  ;;  %v380_v11 = vadd.f32 1.1283791, %v379_v51 }
 0x16e   :  { %v353_v63 = vmul.f32 %v750_v60, %v351_v54  ;;  %vm358_vm2 = vweird.f32 %v750_v60 }
 0x16f   :  { %751 = vrcp.f32 %v391_v59  ;;  %vm359_vm4 = vmor %vm357_vm3, %vm358_vm2  ;;  %v403_v45 = vand.u32 2147483648, %v391_v59  ;;  %v401_v14 = vand.u32 2147483647, %v391_v59  ;;  %vm397_vm7 = vweird.f32 %v391_v59 }
 0x170   :  { %v354_v3 = vsub.f32 1.0, %v353_v63  ;;  %v381_v21 = vmul.f32 %v380_v11, %v1038_v22  ;;  %v413_v22 = vld [vmem:[%s1163_s5] sm:$0xff] }
 0x171   :  { %v404_v20 = vor.u32 1.1754944e-38, %v403_v45  ;;  %vm402_vm9 = vcmp.eq.f32.partialorder %v401_v14, 8.507059e+37 }
 0x172   :  { %v355_v2 = vmul.f32 %v750_v60, %v354_v3 }
 0x174   :  { %v356_v7 = vadd.f32 %v750_v60, %v355_v2 }
 0x175   :  { %v752_v33 = vpop.eup %751 }
 0x176   :  { %v393_v6 = vmul.f32 %v752_v33, %v391_v59  ;;  %v360_v10 = vsel %vm359_vm4, %v750_v60, %v356_v7  ;;  %vm398_vm6 = vweird.f32 %v752_v33 }
 0x177   :  { %v365_v18 = vsel %vm362_vm5, %v364_v8, %v360_v10  ;;  %vm399_vm8 = vmor %vm397_vm7, %vm398_vm6 }
 0x178   :  { %v394_v9 = vsub.f32 1.0, %v393_v6  ;;  %v366_v15 = vmul.f32 %v365_v18, %v341_v27 }
 0x17a   :  { %v395_v13 = vmul.f32 %v752_v33, %v394_v9  ;;  %v720_v29 = vclamps-f32 %v366_v15, 1.0 }
 0x17c   :  { %v396_v37 = vadd.f32 %v752_v33, %v395_v13  ;;  %v409_v34 = vadd.f32 1.0, %v720_v29 }
 0x17e   :  { %v400_v26 = vsel %vm399_vm8, %v752_v33, %v396_v37  ;;  %v411_v38 = vmul.f32 %v409_v34, %v325_v35  ;;  %v434_v33 = vpop.permute.xlu1 %433 }
 0x17f   :  { %v405_v25 = vsel %vm402_vm9, %v404_v20, %v400_v26 }
 0x180   :  { %v406_v28 = vmul.f32 %v405_v25, %v381_v21 }
 0x182   :  { %v721_v31 = vclamps-f32 %v406_v28, 1.0 }
 0x184   :  { %v410_v32 = vadd.f32 1.0, %v721_v31 }
 0x186   :  { %v412_v36 = vmul.f32 %v410_v32, %v326_v12 }
 0x188   :  { %722 = vmatpush.msk.msra.mxu2 %vm454_vm10, %v412_v36  ;;  %734 = vmatpush.msk.msrb.mxu3 %vm454_vm10, %v412_v36 }
 0x18a   :  { %473 = vmatpush.msra.mxu2 %v411_v38  ;;  %735 = vmatpush.msrb.mxu3 %v411_v38 }
 0x18b   :  { %723 = vmatmul.msk.f32.vlgmr.msra.gmra.mxu2 %vm441_vm11, %v413_v22  ;;  %726 = vmatmul.msk.f32.vlgmr.msrb.gmra.mxu3 %vm441_vm11, %v416_v24 }
 0x193   :  { %724 = vmatmul.msk.f32.gmra.mxu2 %vm441_vm11, %v414_v23 }
 0x19b   :  { %725 = vmatmul.msk.f32.gmra.mxu2 %vm441_vm11, %v415_v17 }
 0x20e   :  { %v475_v42 = vpop.f32.mrf.mxu2  ;;  %v484_v43 = vpop.f32.mrf.mxu3 }
 0x20f   :  { %v1058_v62 = vadd.f32 %v475_v42, %v424_v40  ;;  %v1060_v44 = vadd.f32 %v484_v43, %v439_v39 }
 0x211   :  { %v1063_v16 = vmul.f32 0.70710677, %v1058_v62  ;;  %v1066_v46 = vmul.f32 0.70710677, %v1060_v44 }
 0x213   :  { %v495_v47 = vmul.f32 %v1063_v16, %v1063_v16  ;;  %v615_v48 = vmul.f32 %v1066_v46, %v1066_v46 }
 0x215   :  { %v1072_v49 = vmin.f32 %v495_v47, 16.0  ;;  %v616_v50 = vmin.f32 %v615_v48, 16.0 }
 0x216   :  { %v478_v53 = vpop.f32.mrf.mxu2 }
 0x217   :  { %v508_v54 = vmul.f32 3.8918573e-05, %v1072_v49  ;;  %v617_v55 = vmul.f32 2.1237322e-06, %v616_v50  ;;  %v1075_v41 = vadd.f32 %v478_v53, %v429_v52  ;;  %v628_v56 = vmul.f32 3.8918573e-05, %v616_v50 }
 0x218   :  { %v497_v25 = vmul.f32 2.1237322e-06, %v1072_v49 }
 0x219   :  { %v509_v30 = vadd.f32 0.001143296, %v508_v54  ;;  %v618_v57 = vadd.f32 0.00028619796, %v617_v55  ;;  %v629_v58 = vadd.f32 0.001143296, %v628_v56 }
 0x21a   :  { %v1078_v59 = vmul.f32 0.70710677, %v1075_v41  ;;  %v498_v38 = vadd.f32 0.00028619796, %v497_v25 }
 0x21b   :  { %v510_v60 = vmul.f32 %v509_v30, %v1072_v49  ;;  %v619_v61 = vmul.f32 %v618_v57, %v616_v50  ;;  %v630_v63 = vmul.f32 %v629_v58, %v616_v50 }
 0x21c   :  { %v535_v0 = vmul.f32 %v1078_v59, %v1078_v59  ;;  %v499_v42 = vmul.f32 %v498_v38, %v1072_v49 }
 0x21d   :  { %v511_v1 = vadd.f32 0.014752088, %v510_v60  ;;  %v620_v3 = vadd.f32 0.0036580483, %v619_v61  ;;  %v631_v19 = vadd.f32 0.014752088, %v630_v63 }
 0x21e   :  { %v1083_v2 = vmin.f32 %v535_v0, 16.0  ;;  %v481_v4 = vpop.f32.mrf.mxu2  ;;  %v500_v58 = vadd.f32 0.0036580483, %v499_v42 }
 0x21f   :  { %v512_v5 = vmul.f32 %v511_v1, %v1072_v49  ;;  %v632_v51 = vmul.f32 %v631_v19, %v616_v50  ;;  %v1087_v7 = vadd.f32 %v481_v4, %v434_v33  ;;  %v621_v9 = vmul.f32 %v620_v3, %v616_v50 }
 0x220   :  { %v548_v6 = vmul.f32 3.8918573e-05, %v1083_v2  ;;  %v537_v14 = vmul.f32 2.1237322e-06, %v1083_v2 }
 0x221   :  { %v513_v8 = vadd.f32 0.112945676, %v512_v5  ;;  %v633_v10 = vadd.f32 0.112945676, %v632_v51  ;;  %v1092_v13 = vmul.f32 0.70710677, %v1087_v7  ;;  %v501_v5 = vmul.f32 %v500_v58, %v1072_v49 }
 0x222   :  { %v549_v27 = vadd.f32 0.001143296, %v548_v6  ;;  %v622_v37 = vadd.f32 0.05243302, %v621_v9  ;;  %v538_v31 = vadd.f32 0.00028619796, %v537_v14 }
 0x223   :  { %v514_v45 = vmul.f32 %v513_v8, %v1072_v49  ;;  %v634_v18 = vmul.f32 %v633_v10, %v616_v50  ;;  %v575_v21 = vmul.f32 %v1092_v13, %v1092_v13 }
 0x224   :  { %v550_v11 = vmul.f32 %v549_v27, %v1083_v2  ;;  %v623_v12 = vmul.f32 %v622_v37, %v616_v50  ;;  %v539_v22 = vmul.f32 %v538_v31, %v1083_v2  ;;  %v502_v37 = vadd.f32 0.05243302, %v501_v5 }
 0x225   :  { %v635_v15 = vadd.f32 0.4994258, %v634_v18  ;;  %v515_v26 = vadd.f32 0.4994258, %v514_v45  ;;  %v1099_v35 = vmin.f32 %v575_v21, 16.0 }
 0x226   :  { %v551_v20 = vadd.f32 0.014752088, %v550_v11  ;;  %v624_v24 = vadd.f32 0.18741608, %v623_v12  ;;  %v540_v52 = vadd.f32 0.0036580483, %v539_v22  ;;  %v503_v12 = vmul.f32 %v502_v37, %v1072_v49 }
 0x227   :  { %v636_v28 = vmul.f32 %v635_v15, %v616_v50  ;;  %v516_v36 = vmul.f32 %v515_v26, %v1072_v49  ;;  %v577_v17 = vmul.f32 2.1237322e-06, %v1099_v35  ;;  %v588_v39 = vmul.f32 3.8918573e-05, %v1099_v35 }
 0x228   :  { %v552_v29 = vmul.f32 %v551_v20, %v1083_v2  ;;  %v625_v54 = vmul.f32 %v624_v24, %v616_v50  ;;  %v541_v63 = vmul.f32 %v540_v52, %v1083_v2  ;;  %v504_v42 = vadd.f32 0.18741608, %v503_v12 }
 0x229   :  { %v637_v32 = vadd.f32 1.0, %v636_v28  ;;  %v1106_v40 = vadd.f32 1.0, %v516_v36  ;;  %v578_v47 = vadd.f32 0.00028619796, %v577_v17  ;;  %v589_v48 = vadd.f32 0.001143296, %v588_v39 }
 0x22a   :  { %v553_v34 = vadd.f32 0.112945676, %v552_v29  ;;  %v626_v1 = vadd.f32 1.1283791, %v625_v54  ;;  %v542_v27 = vadd.f32 0.05243302, %v541_v63 }
 0x22b   :  { %753 = vrcp.f32 %v637_v32  ;;  %v579_v30 = vmul.f32 %v578_v47, %v1099_v35  ;;  %v590_v57 = vmul.f32 %v589_v48, %v1099_v35  ;;  %v647_v3 = vand.u32 2147483647, %v637_v32 }
 0x22c   :  { %v554_v23 = vmul.f32 %v553_v34, %v1083_v2  ;;  %755 = vrcp.f32 %v1106_v40  ;;  %v649_v19 = vand.u32 2147483648, %v637_v32  ;;  %vm643_vm13 = vweird.f32 %v637_v32 }
 0x22d   :  { %v591_v0 = vadd.f32 0.014752088, %v590_v57  ;;  %v580_v4 = vadd.f32 0.0036580483, %v579_v30  ;;  %v627_v9 = vmul.f32 %v626_v1, %v1066_v46  ;;  %vm648_vm15 = vcmp.eq.f32.partialorder %v647_v3, 8.507059e+37 }
 0x22e   :  { %v555_v43 = vadd.f32 0.4994258, %v554_v23  ;;  %v650_v10 = vor.u32 1.1754944e-38, %v649_v19  ;;  %v543_v46 = vmul.f32 %v542_v27, %v1083_v2  ;;  %v490_v36 = vmul.f32 0.5, %v1060_v44 }
 0x22f   :  { %v592_v33 = vmul.f32 %v591_v0, %v1099_v35  ;;  %v581_v18 = vmul.f32 %v580_v4, %v1099_v35  ;;  %v527_v44 = vand.u32 2147483647, %v1106_v40  ;;  %vm523_vm5 = vweird.f32 %v1106_v40 }
 0x230   :  { %v556_v55 = vmul.f32 %v555_v43, %v1083_v2  ;;  %v544_v22 = vadd.f32 0.18741608, %v543_v46 }
 0x231   :  { %v754_v53 = vpop.eup %753  ;;  %v593_v6 = vadd.f32 0.112945676, %v592_v33  ;;  %v582_v31 = vadd.f32 0.05243302, %v581_v18  ;;  %vm528_vm7 = vcmp.eq.f32.partialorder %v527_v44, 8.507059e+37 }
 0x232   :  { %v639_v56 = vmul.f32 %v754_v53, %v637_v32  ;;  %v1113_v60 = vadd.f32 1.0, %v556_v55  ;;  %vm644_vm12 = vweird.f32 %v754_v53  ;;  %v1119_v8 = vpop.eup %755  ;;  %v545_v47 = vmul.f32 %v544_v22, %v1083_v2 }
 0x233   :  { %vm645_vm14 = vmor %vm643_vm13, %vm644_vm12  ;;  %v594_v11 = vmul.f32 %v593_v6, %v1099_v35  ;;  %v519_v20 = vmul.f32 %v1119_v8, %v1106_v40  ;;  %v583_v39 = vmul.f32 %v582_v31, %v1099_v35  ;;  %vm524_vm2 = vweird.f32 %v1119_v8 }
 0x234   :  { %v640_v61 = vsub.f32 1.0, %v639_v56  ;;  %757 = vrcp.f32 %v1113_v60  ;;  %v569_v54 = vand.u32 2147483648, %v1113_v60  ;;  %vm563_vm3 = vweird.f32 %v1113_v60  ;;  %vm525_vm6 = vmor %vm523_vm5, %vm524_vm2 }
 0x235   :  { %v595_v25 = vadd.f32 0.4994258, %v594_v11  ;;  %v520_v34 = vsub.f32 1.0, %v519_v20  ;;  %v584_v52 = vadd.f32 0.18741608, %v583_v39  ;;  %v529_v2 = vand.u32 2147483648, %v1106_v40 }
 0x236   :  { %v641_v50 = vmul.f32 %v754_v53, %v640_v61  ;;  %v567_v56 = vand.u32 2147483647, %v1113_v60  ;;  %v546_v57 = vadd.f32 1.1283791, %v545_v47  ;;  %v570_v0 = vor.u32 1.1754944e-38, %v569_v54 }
 0x237   :  { %v596_v32 = vmul.f32 %v595_v25, %v1099_v35  ;;  %v521_v43 = vmul.f32 %v1119_v8, %v520_v34  ;;  %v585_v58 = vmul.f32 %v584_v52, %v1099_v35  ;;  %v487_v25 = vmul.f32 0.5, %v1058_v62 }
 0x238   :  { %v642_v51 = vadd.f32 %v754_v53, %v641_v50  ;;  %vm568_vm8 = vcmp.eq.f32.partialorder %v567_v56, 8.507059e+37  ;;  %v547_v19 = vmul.f32 %v546_v57, %v1078_v59 }
 0x239   :  { %v597_v24 = vadd.f32 1.0, %v596_v32  ;;  %v522_v55 = vadd.f32 %v1119_v8, %v521_v43  ;;  %v586_v33 = vadd.f32 1.1283791, %v585_v58 }
 0x23a   :  { %v646_v45 = vsel %vm645_vm14, %v754_v53, %v642_v51  ;;  %v758_v14 = vpop.eup %757  ;;  %v505_v53 = vmul.f32 %v504_v42, %v1072_v49 }
 0x23b   :  { %v651_v15 = vsel %vm648_vm15, %v650_v10, %v646_v45  ;;  %v559_v26 = vmul.f32 %v758_v14, %v1113_v60  ;;  %759 = vrcp.f32 %v597_v24  ;;  %vm564_vm0 = vweird.f32 %v758_v14 }
 0x23c   :  { %v652_v21 = vmul.f32 %v651_v15, %v627_v9  ;;  %vm565_vm4 = vmor %vm563_vm3, %vm564_vm0  ;;  %v506_v63 = vadd.f32 1.1283791, %v505_v53  ;;  %v526_v1 = vsel %vm525_vm6, %v1119_v8, %v522_v55  ;;  %v530_v60 = vor.u32 1.1754944e-38, %v529_v2 }
 0x23d   :  { %v560_v29 = vsub.f32 1.0, %v559_v26  ;;  %v609_v4 = vand.u32 2147483648, %v597_v24  ;;  %v607_v40 = vand.u32 2147483647, %v597_v24  ;;  %vm603_vm10 = vweird.f32 %v597_v24 }
 0x23e   :  { %v730_v28 = vclamps-f32 %v652_v21, 1.0  ;;  %v531_v51 = vsel %vm528_vm7, %v530_v60, %v526_v1  ;;  %v507_v35 = vmul.f32 %v506_v63, %v1063_v16  ;;  %v587_v27 = vmul.f32 %v586_v33, %v1092_v13 }
 0x23f   :  { %v561_v17 = vmul.f32 %v758_v14, %v560_v29  ;;  %v610_v8 = vor.u32 1.1754944e-38, %v609_v4  ;;  %vm608_vm12 = vcmp.eq.f32.partialorder %v607_v40, 8.507059e+37  ;;  %v489_v15 = vmul.f32 0.5, %v1087_v7  ;;  %v663_v29 = vld [vmem:[%s1165_s7] sm:$0xf] }
 0x240   :  { %v658_v38 = vadd.f32 1.0, %v730_v28  ;;  %v532_v10 = vmul.f32 %v531_v51, %v507_v35  ;;  %v488_v16 = vmul.f32 0.5, %v1075_v41  ;;  %v668_v41 = vpop.permute.xlu1 %667 }
 0x241   :  { %v562_v48 = vadd.f32 %v758_v14, %v561_v17  ;;  %v760_v30 = vpop.eup %759 }
 0x242   :  { %v662_v23 = vmul.f32 %v658_v38, %v490_v36  ;;  %v599_v61 = vmul.f32 %v760_v30, %v597_v24  ;;  %vm604_vm9 = vweird.f32 %v760_v30  ;;  %v727_v37 = vclamps-f32 %v532_v10, 1.0 }
 0x243   :  { %v566_v49 = vsel %vm565_vm4, %v758_v14, %v562_v48  ;;  %vm605_vm11 = vmor %vm603_vm10, %vm604_vm9 }
 0x244   :  { %685 = vmatpush.msra.mxu3 %v662_v23  ;;  %v600_v3 = vsub.f32 1.0, %v599_v61  ;;  %v571_v50 = vsel %vm568_vm8, %v570_v0, %v566_v49  ;;  %v655_v46 = vadd.f32 1.0, %v727_v37 }
 0x245   :  { %v572_v6 = vmul.f32 %v571_v50, %v547_v19 }
 0x246   :  { %v601_v5 = vmul.f32 %v760_v30, %v600_v3  ;;  %v659_v13 = vmul.f32 %v655_v46, %v487_v25 }
 0x247   :  { %v728_v11 = vclamps-f32 %v572_v6, 1.0 }
 0x248   :  { %v602_v9 = vadd.f32 %v760_v30, %v601_v5 }
 0x249   :  { %v656_v21 = vadd.f32 1.0, %v728_v11 }
 0x24a   :  { %v606_v45 = vsel %vm605_vm11, %v760_v30, %v602_v9 }
 0x24b   :  { %v611_v59 = vsel %vm608_vm12, %v610_v8, %v606_v45  ;;  %v660_v28 = vmul.f32 %v656_v21, %v488_v16 }
 0x24c   :  { %v612_v18 = vmul.f32 %v611_v59, %v587_v27 }
 0x24e   :  { %v729_v14 = vclamps-f32 %v612_v18, 1.0 }
 0x250   :  { %v657_v20 = vadd.f32 1.0, %v729_v14 }
 0x252   :  { %v661_v26 = vmul.f32 %v657_v20, %v489_v15 }
 0x254   :  { %686 = vmatpush.msra.mxu3 %v661_v26 }
 0x256   :  { %687 = vmatpush.msra.mxu3 %v660_v28 }
 0x258   :  { %688 = vmatpush.msra.mxu3 %v659_v13 }
 0x259   :  { %731 = vmatmul.msk.f32.vlgmr.msra.gmra.mxu3 %vm295_vm1, %v663_v29 }
 0x2dc   :  { %v690_v7 = vpop.f32.mrf.mxu3 }
 0x2dd   :  { %v691_v62 = vadd.f32 %v690_v7, %v668_v41 }
 0x2df   :  { %693 = vst [vmem:[#allocation2] sm:$0xf] %v691_v62 }
 0x2e0   :  { %704 = dma.vmem_to_hbm [thread:$0]  %s700_s28, 64, %s702_s10, [#allocation3]  }
 0x2e1   :  { %785 = dma.done.wait [#allocation3], 64  }
 0x2e2   :  { %786 = vsyncadd [#allocation3], 4294967232 }
 0x2e3   :  { %709 = vsyncpa [#allocation3], 1 }

</bundles_post_ra>
